<compile_context>
chip_gen: v7x
topology: tpu7x:2x2x1
jax: 0.10.0
libtpu: 0.0.40
codegen_flags: <defaults>
</compile_context>

<pallas_src>
import jax
import jax.numpy as jnp
import numpy as np
from jax.experimental import pallas as pl
from jax.experimental.pallas import tpu as pltpu

# ----------------------------------------------------------------------------
# Configuration consistent with the Aeris RND motivator
# ----------------------------------------------------------------------------
STATE_CH   = 4            # input_shape[0]
WIDTH      = 32           # input_shape[1]
ACTION_DIM = 4
KCOUNT     = 8            # config.*_kernels_count
HIDDEN     = 32           # config.rnd_output
BATCH      = 2

CHANNELS = STATE_CH + ACTION_DIM            # conv-1 input channels
FC_COUNT = KCOUNT * WIDTH // 4              # flattened conv-3 features (= 64)
LANES    = 128                              # lane-dense padded width

# (kernel, stride, pad, C_in, C_out) for the three Conv1d layers
CONV_CFG = (
    (8, 4, 2, CHANNELS,   KCOUNT),
    (4, 2, 1, KCOUNT,     2 * KCOUNT),
    (3, 1, 1, 2 * KCOUNT, 2 * KCOUNT),
)

# Row offsets of each matrix inside the single packed weight buffer (all segments
# start on 16-row boundaries so bf16 sublane-packed slices stay tile-aligned).
T1S_OFF, T1S_ROWS = 0,   STATE_CH * WIDTH   # (128, 128) state Toeplitz
T1A_OFF, T1A_ROWS = 128, 16                 # ( 16, 128) action part (rows 4.. zero)
T2_OFF            = 144                     # (128, 128)
T3_OFF            = 272                     # (128, 128)
FW1_OFF           = 400                     # (128, 128)
FW2_OFF           = 528                     # (128, 128)
FW3_OFF           = 656                     # (128, 128)
P_ROWS            = 784                     # total packed rows


# ----------------------------------------------------------------------------
# Pallas kernel: one batch tile, 6 MXU matmuls + bias + ReLU, nothing else
# ----------------------------------------------------------------------------
def rnd_forward_kernel(x_ref, a_ref, w_ref, b_ref, o_ref):
    bias = b_ref[...]                              # (8, 128) f32, one row per layer
    dt = x_ref.dtype                               # compute (MXU operand) dtype

    def mm(x, off, rows=LANES):
        return jnp.dot(x, w_ref[off:off + rows, :],
                       preferred_element_type=jnp.float32)

    # Layer 1: Toeplitz(state) + Toeplitz_sum(action) + (bias - Toeplitz(mean))
    y = mm(x_ref[...], T1S_OFF) + mm(a_ref[...], T1A_OFF, T1A_ROWS) + bias[0]
    x = jnp.maximum(y, 0.0).astype(dt)
    # Conv2, Conv3 (as Toeplitz matmuls), FC1, FC2 -- all ReLU
    x = jnp.maximum(mm(x, T2_OFF)  + bias[1], 0.0).astype(dt)
    x = jnp.maximum(mm(x, T3_OFF)  + bias[2], 0.0).astype(dt)
    x = jnp.maximum(mm(x, FW1_OFF) + bias[3], 0.0).astype(dt)
    x = jnp.maximum(mm(x, FW2_OFF) + bias[4], 0.0).astype(dt)
    # FC3 (no ReLU), lane-dense f32 store
    o_ref[...] = mm(x, FW3_OFF) + bias[5]


# ----------------------------------------------------------------------------
# One-time parameter packing (hoisted out of the per-call forward path)
# ----------------------------------------------------------------------------
def _conv_toeplitz(w, stride, pad, lin, in_order):
    """Lower a Conv1d to a dense (Lin*Cin, Lout*Cout) matrix.
    in_order 'cw': input flat index = c*Lin + l  (raw NCW flatten, layer 1)
    in_order 'wc': input flat index = l*Cin + c  (previous layer's output layout)
    Output flat index is always l*Cout + c (position-major, channel-minor)."""
    cout, cin, kk = w.shape
    n_in = lin * cin
    eye = jnp.eye(n_in, dtype=jnp.float32)
    if in_order == "cw":
        xb = eye.reshape(n_in, cin, lin)
    else:
        xb = jnp.transpose(eye.reshape(n_in, lin, cin), (0, 2, 1))
    yb = jax.lax.conv_general_dilated(
        xb, w, (stride,), [(pad, pad)],
        dimension_numbers=("NCH", "OIH", "NCH"))          # (n_in, cout, lout)
    lout = yb.shape[-1]
    T = jnp.transpose(yb, (0, 2, 1)).reshape(n_in, lout * cout)
    return T, lout


def pack_params(p, compute_dtype=jnp.bfloat16):
    """Re-pack PyTorch-shaped parameters into kernel-ready layout. Call ONCE
    whenever params change; the per-call forward does no weight re-packing."""
    c1, c2, c3 = KCOUNT, 2 * KCOUNT, 2 * KCOUNT

    # Block-Toeplitz conv matrices (built via lax.conv on an identity basis).
    T1_full, l1 = _conv_toeplitz(p["w1"], 4, 2, WIDTH, "cw")        # (256, 64)
    T1s = T1_full[:STATE_CH * WIDTH]                                 # (128, 64)
    T1a = T1_full[STATE_CH * WIDTH:].reshape(ACTION_DIM, WIDTH, -1).sum(1)  # (4, 64)
    T2, l2 = _conv_toeplitz(p["w2"], 2, 1, l1, "wc")                 # (64, 64)
    T3, l3 = _conv_toeplitz(p["w3"], 1, 1, l2, "wc")                 # (64, 64)

    # Biases broadcast per output position; running-mean subtraction folded into b1.
    b1 = jnp.broadcast_to(p["b1"][None, :], (l1, c1)).reshape(-1)
    b1 = b1 - p["mean"].reshape(-1) @ T1_full
    b2 = jnp.broadcast_to(p["b2"][None, :], (l2, c2)).reshape(-1)
    b3 = jnp.broadcast_to(p["b3"][None, :], (l3, c3)).reshape(-1)

    # FC1 rows permuted from PyTorch Flatten order (c*L3 + l) to kernel order (l*C3 + c).
    fw1 = jnp.transpose(p["fw1"].reshape(HIDDEN, c3, l3),
                        (2, 1, 0)).reshape(FC_COUNT, HIDDEN)
    fw2, fw3 = p["fw2"].T, p["fw3"].T

    def pad_mat(m, rows):
        return jnp.zeros((rows, LANES), jnp.float32).at[:m.shape[0], :m.shape[1]].set(m)

    w_buf = jnp.concatenate(
        [pad_mat(T1s, T1S_ROWS), pad_mat(T1a, T1A_ROWS),
         pad_mat(T2, LANES), pad_mat(T3, LANES),
         pad_mat(fw1, LANES), pad_mat(fw2, LANES), pad_mat(fw3, LANES)],
        axis=0).astype(compute_dtype)                                 # (784, 128)

    def pad_vec(v):
        return jnp.zeros((LANES,), jnp.float32).at[:v.shape[0]].set(v)

    zero = jnp.zeros((LANES,), jnp.float32)
    bias_buf = jnp.stack([pad_vec(b1), pad_vec(b2), pad_vec(b3),
                          pad_vec(p["fb1"]), pad_vec(p["fb2"]), pad_vec(p["fb3"]),
                          zero, zero], axis=0)                        # (8, 128) f32
    return {"w": w_buf, "bias": bias_buf}


# ----------------------------------------------------------------------------
# Forward wrapper: flatten/pad plumbing only, batched grid over the batch axis
# ----------------------------------------------------------------------------
@jax.jit
def rnd_forward(state, action, packed):
    # state: (B, STATE_CH, WIDTH) NCW; action: (B, ACTION_DIM)
    b = state.shape[0]
    bt = 256 if b >= 256 else (128 if b >= 128 else ((b + 7) // 8) * 8)
    pb = ((b + bt - 1) // bt) * bt
    dt = packed["w"].dtype

    x = state.reshape(b, STATE_CH * WIDTH).astype(dt)    # NCW flatten — free, no transpose
    a = jnp.pad(action.astype(dt), ((0, pb - b), (0, T1A_ROWS - ACTION_DIM)))
    if pb != b:
        x = jnp.pad(x, ((0, pb - b), (0, 0)))

    out = pl.pallas_call(
        rnd_forward_kernel,
        out_shape=jax.ShapeDtypeStruct((pb, LANES), jnp.float32),
        grid=(pb // bt,),
        in_specs=[
            pl.BlockSpec((bt, STATE_CH * WIDTH), lambda i: (i, 0)),
            pl.BlockSpec((bt, T1A_ROWS),         lambda i: (i, 0)),
            pl.BlockSpec((P_ROWS, LANES),        lambda i: (0, 0)),   # one weight DMA
            pl.BlockSpec((8, LANES),             lambda i: (0, 0)),   # one bias DMA
        ],
        out_specs=pl.BlockSpec((bt, LANES), lambda i: (i, 0)),
        compiler_params=pltpu.CompilerParams(
            dimension_semantics=("parallel",)),
    )(x, a, packed["w"], packed["bias"])

    return out[:b, :HIDDEN]


# ----------------------------------------------------------------------------
# Deterministic synthetic parameters (shapes mirror the nn.Module)
# ----------------------------------------------------------------------------
def init_params(key):
    # TODO(synk): orthogonal init replaced by scaled Gaussian (synthetic weights,
    # same shapes); RunningStats mean starts at zero as in a fresh module.
    ks = jax.random.split(key, 12)
    def rnd(k, shape, scale):
        return scale * jax.random.normal(k, shape, jnp.float32)
    p = {"mean": jnp.zeros((CHANNELS, WIDTH), jnp.float32)}
    i = 0
    for li, (kk, _, _, cin, cout) in enumerate(CONV_CFG, start=1):
        p[f"w{li}"] = rnd(ks[i], (cout, cin, kk), np.sqrt(2.0 / (cin * kk))); i += 1
        p[f"b{li}"] = rnd(ks[i], (cout,), 0.01); i += 1
    p["fw1"] = rnd(ks[i], (HIDDEN, FC_COUNT), 0.1 / np.sqrt(FC_COUNT)); i += 1
    p["fb1"] = rnd(ks[i], (HIDDEN,), 0.01); i += 1
    p["fw2"] = rnd(ks[i], (HIDDEN, HIDDEN), 0.1 / np.sqrt(HIDDEN)); i += 1
    p["fb2"] = rnd(ks[i], (HIDDEN,), 0.01); i += 1
    p["fw3"] = rnd(ks[i], (HIDDEN, HIDDEN), 0.05 / np.sqrt(HIDDEN)); i += 1
    p["fb3"] = rnd(ks[i], (HIDDEN,), 0.01); i += 1
    return p


# ----------------------------------------------------------------------------
# Pure-JAX reference with PyTorch semantics (for correctness check)
# ----------------------------------------------------------------------------
def ref_forward(state, action, p):
    a = jnp.broadcast_to(action[:, :, None], (action.shape[0], ACTION_DIM, WIDTH))
    x = jnp.concatenate([state, a], axis=1) - p["mean"][None]
    def conv(x, w, b, stride, pad):
        y = jax.lax.conv_general_dilated(x, w, (stride,), [(pad, pad)],
                                         dimension_numbers=("NCH", "OIH", "NCH"))
        return jax.nn.relu(y + b[None, :, None])
    h = conv(x, p["w1"], p["b1"], 4, 2)
    h = conv(h, p["w2"], p["b2"], 2, 1)
    h = conv(h, p["w3"], p["b3"], 1, 1)
    flat = h.reshape(h.shape[0], -1)                 # PyTorch Flatten: channel-major
    f = jax.nn.relu(flat @ p["fw1"].T + p["fb1"])
    f = jax.nn.relu(f @ p["fw2"].T + p["fb2"])
    return f @ p["fw3"].T + p["fb3"]


if __name__ == "__main__":
    key = jax.random.PRNGKey(0)
    k_state, k_action, k_params = jax.random.split(key, 3)
    state = jax.random.normal(k_state, (BATCH, STATE_CH, WIDTH), jnp.float32)
    action = jax.random.normal(k_action, (BATCH, ACTION_DIM), jnp.float32)
    params = init_params(k_params)

    ref = ref_forward(state, action, params)
    denom = float(jnp.max(jnp.abs(ref))) + 1e-8

    # f32-packed path: the restructuring (Toeplitz, mean fold, lane padding, NCW
    # row ordering) must match the reference up to rounding / reassociation.
    packed_f32 = pack_params(params, compute_dtype=jnp.float32)
    out32 = jax.block_until_ready(rnd_forward(state, action, packed_f32))
    assert out32.shape == (BATCH, HIDDEN) and out32.dtype == jnp.float32
    err32 = float(jnp.max(jnp.abs(out32 - ref)))
    assert err32 / denom < 1e-3, (err32, denom)

    # bf16 MXU-operand path (the performant configuration on v5e/v6e/v7x):
    # f32 accumulation + f32 bias/ReLU, looser tolerance per bf16 rounding.
    packed = pack_params(params)                     # packed once, reused per call
    out = jax.block_until_ready(rnd_forward(state, action, packed))
    assert out.shape == (BATCH, HIDDEN) and out.dtype == jnp.float32
    err = float(jnp.max(jnp.abs(out - ref)))
    assert err / denom < 5e-2, (err, denom)

    print("KERNEL_OK")
</pallas_src>

<mosaic_0001>
module attributes {stable_mosaic.version = 11 : i64} {
  func.func @rnd_forward_kernel(%arg0: i32, %arg1: memref<8x128xf32, #tpu.memory_space<vmem>>, %arg2: memref<8x16xf32, #tpu.memory_space<vmem>>, %arg3: memref<784x128xf32, #tpu.memory_space<vmem>>, %arg4: memref<8x128xf32, #tpu.memory_space<vmem>>, %arg5: memref<8x128xf32, #tpu.memory_space<vmem>>) attributes {dimension_semantics = [#tpu.dimension_semantics<parallel>], iteration_bounds = array<i64: 1>, scalar_prefetch = 0 : i64, scratch_operands = 0 : i64, tpu.core_type = #tpu.core_type<tc>, window_params = [{transform_indices = @transform_0, window_bounds = array<i64: 8, 128>}, {transform_indices = @transform_1, window_bounds = array<i64: 8, 16>}, {pipeline_mode = #tpu.pipeline_mode<synchronous>, transform_indices = @transform_2, window_bounds = array<i64: 784, 128>}, {pipeline_mode = #tpu.pipeline_mode<synchronous>, transform_indices = @transform_3, window_bounds = array<i64: 8, 128>}, {transform_indices = @transform_4, window_bounds = array<i64: 8, 128>}]} {
    %c0 = arith.constant 0 : index
    %c0_0 = arith.constant 0 : index
    %0 = vector.load %arg4[%c0, %c0_0] : memref<8x128xf32, #tpu.memory_space<vmem>>, vector<8x128xf32>
    %c0_1 = arith.constant 0 : index
    %c0_2 = arith.constant 0 : index
    %1 = vector.load %arg1[%c0_1, %c0_2] : memref<8x128xf32, #tpu.memory_space<vmem>>, vector<8x128xf32>
    %c0_3 = arith.constant 0 : index
    %c0_4 = arith.constant 0 : index
    %2 = vector.load %arg3[%c0_3, %c0_4] : memref<784x128xf32, #tpu.memory_space<vmem>>, vector<128x128xf32>
    %cst = arith.constant dense<0.000000e+00> : vector<8x128xf32>
    %3 = tpu.matmul %1, %2, %cst {dimension_numbers = #tpu.dot_dimension_numbers<[1], [0], [0], [1], [0, 0, 1, 1], [], []>} : vector<8x128xf32>, vector<128x128xf32>, vector<8x128xf32> -> vector<8x128xf32>
    %c0_5 = arith.constant 0 : index
    %c0_6 = arith.constant 0 : index
    %4 = vector.load %arg2[%c0_5, %c0_6] : memref<8x16xf32, #tpu.memory_space<vmem>>, vector<8x16xf32>
    %c128 = arith.constant 128 : index
    %c0_7 = arith.constant 0 : index
    %5 = vector.load %arg3[%c128, %c0_7] : memref<784x128xf32, #tpu.memory_space<vmem>>, vector<16x128xf32>
    %cst_8 = arith.constant dense<0.000000e+00> : vector<8x128xf32>
    %6 = tpu.matmul %4, %5, %cst_8 {dimension_numbers = #tpu.dot_dimension_numbers<[1], [0], [0], [1], [0, 0, 1, 1], [], []>} : vector<8x16xf32>, vector<16x128xf32>, vector<8x128xf32> -> vector<8x128xf32>
    %7 = arith.addf %3, %6 : vector<8x128xf32>
    %8 = vector.extract_strided_slice %0 {offsets = [0, 0], sizes = [1, 128], strides = [1, 1]} : vector<8x128xf32> to vector<1x128xf32>
    %9 = vector.shape_cast %8 : vector<1x128xf32> to vector<128xf32>
    %10 = vector.shape_cast %9 : vector<128xf32> to vector<1x128xf32>
    %11 = vector.broadcast %10 : vector<1x128xf32> to vector<8x128xf32>
    %12 = arith.addf %7, %11 : vector<8x128xf32>
    %cst_9 = arith.constant 0.000000e+00 : f32
    %13 = vector.broadcast %cst_9 : f32 to vector<8x128xf32>
    %14 = arith.maximumf %12, %13 : vector<8x128xf32>
    %c144 = arith.constant 144 : index
    %c0_10 = arith.constant 0 : index
    %15 = vector.load %arg3[%c144, %c0_10] : memref<784x128xf32, #tpu.memory_space<vmem>>, vector<128x128xf32>
    %cst_11 = arith.constant dense<0.000000e+00> : vector<8x128xf32>
    %16 = tpu.matmul %14, %15, %cst_11 {dimension_numbers = #tpu.dot_dimension_numbers<[1], [0], [0], [1], [0, 0, 1, 1], [], []>} : vector<8x128xf32>, vector<128x128xf32>, vector<8x128xf32> -> vector<8x128xf32>
    %17 = vector.extract_strided_slice %0 {offsets = [1, 0], sizes = [1, 128], strides = [1, 1]} : vector<8x128xf32> to vector<1x128xf32>
    %18 = vector.shape_cast %17 : vector<1x128xf32> to vector<128xf32>
    %19 = vector.shape_cast %18 : vector<128xf32> to vector<1x128xf32>
    %20 = vector.broadcast %19 : vector<1x128xf32> to vector<8x128xf32>
    %21 = arith.addf %16, %20 : vector<8x128xf32>
    %cst_12 = arith.constant 0.000000e+00 : f32
    %22 = vector.broadcast %cst_12 : f32 to vector<8x128xf32>
    %23 = arith.maximumf %21, %22 : vector<8x128xf32>
    %c272 = arith.constant 272 : index
    %c0_13 = arith.constant 0 : index
    %24 = vector.load %arg3[%c272, %c0_13] : memref<784x128xf32, #tpu.memory_space<vmem>>, vector<128x128xf32>
    %cst_14 = arith.constant dense<0.000000e+00> : vector<8x128xf32>
    %25 = tpu.matmul %23, %24, %cst_14 {dimension_numbers = #tpu.dot_dimension_numbers<[1], [0], [0], [1], [0, 0, 1, 1], [], []>} : vector<8x128xf32>, vector<128x128xf32>, vector<8x128xf32> -> vector<8x128xf32>
    %26 = vector.extract_strided_slice %0 {offsets = [2, 0], sizes = [1, 128], strides = [1, 1]} : vector<8x128xf32> to vector<1x128xf32>
    %27 = vector.shape_cast %26 : vector<1x128xf32> to vector<128xf32>
    %28 = vector.shape_cast %27 : vector<128xf32> to vector<1x128xf32>
    %29 = vector.broadcast %28 : vector<1x128xf32> to vector<8x128xf32>
    %30 = arith.addf %25, %29 : vector<8x128xf32>
    %cst_15 = arith.constant 0.000000e+00 : f32
    %31 = vector.broadcast %cst_15 : f32 to vector<8x128xf32>
    %32 = arith.maximumf %30, %31 : vector<8x128xf32>
    %c400 = arith.constant 400 : index
    %c0_16 = arith.constant 0 : index
    %33 = vector.load %arg3[%c400, %c0_16] : memref<784x128xf32, #tpu.memory_space<vmem>>, vector<128x128xf32>
    %cst_17 = arith.constant dense<0.000000e+00> : vector<8x128xf32>
    %34 = tpu.matmul %32, %33, %cst_17 {dimension_numbers = #tpu.dot_dimension_numbers<[1], [0], [0], [1], [0, 0, 1, 1], [], []>} : vector<8x128xf32>, vector<128x128xf32>, vector<8x128xf32> -> vector<8x128xf32>
    %35 = vector.extract_strided_slice %0 {offsets = [3, 0], sizes = [1, 128], strides = [1, 1]} : vector<8x128xf32> to vector<1x128xf32>
    %36 = vector.shape_cast %35 : vector<1x128xf32> to vector<128xf32>
    %37 = vector.shape_cast %36 : vector<128xf32> to vector<1x128xf32>
    %38 = vector.broadcast %37 : vector<1x128xf32> to vector<8x128xf32>
    %39 = arith.addf %34, %38 : vector<8x128xf32>
    %cst_18 = arith.constant 0.000000e+00 : f32
    %40 = vector.broadcast %cst_18 : f32 to vector<8x128xf32>
    %41 = arith.maximumf %39, %40 : vector<8x128xf32>
    %c528 = arith.constant 528 : index
    %c0_19 = arith.constant 0 : index
    %42 = vector.load %arg3[%c528, %c0_19] : memref<784x128xf32, #tpu.memory_space<vmem>>, vector<128x128xf32>
    %cst_20 = arith.constant dense<0.000000e+00> : vector<8x128xf32>
    %43 = tpu.matmul %41, %42, %cst_20 {dimension_numbers = #tpu.dot_dimension_numbers<[1], [0], [0], [1], [0, 0, 1, 1], [], []>} : vector<8x128xf32>, vector<128x128xf32>, vector<8x128xf32> -> vector<8x128xf32>
    %44 = vector.extract_strided_slice %0 {offsets = [4, 0], sizes = [1, 128], strides = [1, 1]} : vector<8x128xf32> to vector<1x128xf32>
    %45 = vector.shape_cast %44 : vector<1x128xf32> to vector<128xf32>
    %46 = vector.shape_cast %45 : vector<128xf32> to vector<1x128xf32>
    %47 = vector.broadcast %46 : vector<1x128xf32> to vector<8x128xf32>
    %48 = arith.addf %43, %47 : vector<8x128xf32>
    %cst_21 = arith.constant 0.000000e+00 : f32
    %49 = vector.broadcast %cst_21 : f32 to vector<8x128xf32>
    %50 = arith.maximumf %48, %49 : vector<8x128xf32>
    %c656 = arith.constant 656 : index
    %c0_22 = arith.constant 0 : index
    %51 = vector.load %arg3[%c656, %c0_22] : memref<784x128xf32, #tpu.memory_space<vmem>>, vector<128x128xf32>
    %cst_23 = arith.constant dense<0.000000e+00> : vector<8x128xf32>
    %52 = tpu.matmul %50, %51, %cst_23 {dimension_numbers = #tpu.dot_dimension_numbers<[1], [0], [0], [1], [0, 0, 1, 1], [], []>} : vector<8x128xf32>, vector<128x128xf32>, vector<8x128xf32> -> vector<8x128xf32>
    %53 = vector.extract_strided_slice %0 {offsets = [5, 0], sizes = [1, 128], strides = [1, 1]} : vector<8x128xf32> to vector<1x128xf32>
    %54 = vector.shape_cast %53 : vector<1x128xf32> to vector<128xf32>
    %55 = vector.shape_cast %54 : vector<128xf32> to vector<1x128xf32>
    %56 = vector.broadcast %55 : vector<1x128xf32> to vector<8x128xf32>
    %57 = arith.addf %52, %56 : vector<8x128xf32>
    %c0_24 = arith.constant 0 : index
    %c0_25 = arith.constant 0 : index
    %58 = vector.load %arg5[%c0_24, %c0_25] : memref<8x128xf32, #tpu.memory_space<vmem>>, vector<8x128xf32>
    tpu.vector_store %arg5[%c0_24, %c0_25], %57 {strides = array<i32>} : memref<8x128xf32, #tpu.memory_space<vmem>>, vector<8x128xf32>,
    return
  }
  func.func @transform_0(%arg0: i32) -> (i32, i32) {
    %c0_i32 = arith.constant 0 : i32
    %c0_i32_0 = arith.constant 0 : i32
    return %arg0, %c0_i32 : i32, i32
  }
  func.func @transform_1(%arg0: i32) -> (i32, i32) {
    %c0_i32 = arith.constant 0 : i32
    %c0_i32_0 = arith.constant 0 : i32
    return %arg0, %c0_i32 : i32, i32
  }
  func.func @transform_2(%arg0: i32) -> (i32, i32) {
    %c0_i32 = arith.constant 0 : i32
    %c0_i32_0 = arith.constant 0 : i32
    %c0_i32_1 = arith.constant 0 : i32
    return %c0_i32, %c0_i32_0 : i32, i32
  }
  func.func @transform_3(%arg0: i32) -> (i32, i32) {
    %c0_i32 = arith.constant 0 : i32
    %c0_i32_0 = arith.constant 0 : i32
    %c0_i32_1 = arith.constant 0 : i32
    return %c0_i32, %c0_i32_0 : i32, i32
  }
  func.func @transform_4(%arg0: i32) -> (i32, i32) {
    %c0_i32 = arith.constant 0 : i32
    %c0_i32_0 = arith.constant 0 : i32
    return %arg0, %c0_i32 : i32, i32
  }
}

</mosaic_0001>

<bundles_post_ra>
// kernel: rnd_forward.1
= control target key start
LH: loop header
LB: loop body
LE: loop exit
PB: predicated region body
PF: predicated region fallthrough
CT: control target
= control target key end

     0   :  { %9 = vsyncpa [#allocation3], 0  ;;  %s1162_s15 = smov [#allocation2]   ;;  %s1296_s0 = inlined_call_operand.vmem [shape: f32[8,128], index: 0, kind: input, shape index: {}]   ;;  %s1297_s1 = inlined_call_operand.vmem [shape: f32[8,16], index: 1, kind: input, shape index: {}]   ;;  %s1298_s2 = inlined_call_operand.hbm [shape: f32[784,128], index: 2, kind: input, shape index: {}]   ;;  %s1299_s3 = inlined_call_operand.vmem [shape: f32[8,128], index: 3, kind: input, shape index: {}]   ;;  %s1300_s4 = inlined_call_operand.vmem [shape: f32[8,128], index: 4, kind: output, shape index: {}]  }
   0x1   :  { %s19_s16 = sshll.u32 %s1162_s15, 4  ;;  %s1138_s19 = scalar_lea.hbm %s1298_s2, 12544  ;;  %s20_s16 = int_to_ptr.vmem [resolvable:$true] %s19_s16 }
   0x2   :  { %p1139_p0 = scmp.ne.s32.totalorder %s1298_s2, %s1138_s19  ;;  %p1142_p1 = scmp.lt.u32.totalorder %s1138_s19, %s1298_s2 }
   0x4   :  { %p1144_p2 = pnand %p1142_p1, %p1139_p0 }
   0x6   :  { %1147 = shalt.err (!%p1144_p2)
}
   0x7   :  { %s1148_s24 = scalar_lea.vmem %s20_s16, 12544  ;;  %p1153_p4 = scmp.lt.s32.totalorder %s20_s16, %s20_s16 }
   0x8   :  { %p1149_p3 = scmp.ne.s32.totalorder %s20_s16, %s1148_s24  ;;  %p1154_p5 = scmp.lt.s32.totalorder %s1148_s24, %s1148_s24 }
   0xa   :  { %p1155_p6 = por %p1154_p5, %p1153_p4 }
   0xc   :  { %p1156_p7 = pnand %p1155_p6, %p1149_p3 }
   0xe   :  { %1159 = shalt.err (!%p1156_p7)
}
   0xf   :  { %s1163_s25 = smov 128   ;;  %s1164_s26 = smov 8  }
  0x10   :  { %25 = dma.hbm_to_vmem [thread:$0]  %s1298_s2, 12544, %s20_s16, [#allocation3], %s1163_s25, %s1163_s25, %s1164_s26  }
  0x11   :  { %1160 = dma.done.wait [#allocation3], 12544  }
  0x12   :  { %1161 = vsyncadd [#allocation3], 4294954752  ;;  %v1165_v0 = vmov 0.0|0.0   ;;  %vm1166_vm0 = vmmov 0   ;;  %v1167_v1 = vmov 0.0   ;;  %v33_v2 = vld [vmem:[#allocation2] sm:$0xff] }
  0x13   :  { %988 = vmatprep.subr.bf16.mxu1 %v1165_v0  ;;  %985 = vmatprep.subr.bf16.mxu0 %v1165_v0  ;;  %v34_v3 = vld [vmem:[#allocation2 + $0x8] sm:$0xff]  ;;  %v35_v4 = vld [vmem:[#allocation2 + $0x10] sm:$0xff]  ;;  %v36_v6 = vld [vmem:[#allocation2 + $0x18] sm:$0xff]  ;;  %vm52_vm1 = vcmask 130048  }
  0x14   :  { %772 = vmatprep.mubr.msk.f32.mxu0 %vm1166_vm0, %v1167_v1  ;;  %807 = vmatprep.mubr.msk.f32.mxu1 %vm1166_vm0, %v1167_v1  ;;  %v989_v5 = vpack.c.bf16 %v34_v3, %v33_v2  ;;  %v992_v7 = vpack.c.bf16 %v36_v6, %v35_v4  ;;  %v37_v8 = vld [vmem:[#allocation2 + $0x20] sm:$0xff]  ;;  %v38_v9 = vld [vmem:[#allocation2 + $0x28] sm:$0xff]  ;;  %v202_v13 = vld [vmem:[#allocation2 + $0x90] sm:$0xff] }
  0x15   :  { %v50_v10 = vld [vmem:[#allocation2 + $0x80] sm:$0xff]  ;;  %v51_v11 = vld [vmem:[#allocation2 + $0x88] sm:$0xff]  ;;  %v995_v14 = vpack.c.bf16 %v38_v9, %v37_v8  ;;  %v203_v15 = vld [vmem:[#allocation2 + $0x98] sm:$0xff] }
  0x16   :  { %990 = vmatpush3.bf16.msra.mxu1 %v989_v5  ;;  %v986_v12 = vpack.c.bf16 %v51_v11, %v50_v10  ;;  %v39_v16 = vld [vmem:[#allocation2 + $0x30] sm:$0xff]  ;;  %v40_v17 = vld [vmem:[#allocation2 + $0x38] sm:$0xff]  ;;  %v49_v18 = vld [vmem:[%s1297_s1] sm:$0xff]  ;;  %v1013_v19 = vpack.c.bf16 %v203_v15, %v202_v13 }
  0x17   :  { %991 = vmatprep.subr.bf16.mxu1 %v1165_v0  ;;  %v204_v20 = vld [vmem:[#allocation2 + $0xa0] sm:$0xff]  ;;  %v205_v21 = vld [vmem:[#allocation2 + $0xa8] sm:$0xff]  ;;  %v998_v22 = vpack.c.bf16 %v40_v17, %v39_v16  ;;  %v206_v26 = vld [vmem:[#allocation2 + $0xb0] sm:$0xff]  ;;  %v196_v16 = vlaneseq }
  0x18   :  { %987 = vmatpush3.bf16.msra.mxu0 %v986_v12  ;;  %v41_v23 = vld [vmem:[#allocation2 + $0x40] sm:$0xff]  ;;  %v42_v24 = vld [vmem:[#allocation2 + $0x48] sm:$0xff]  ;;  %v1016_v25 = vpack.c.bf16 %v205_v21, %v204_v20  ;;  %v207_v27 = vld [vmem:[#allocation2 + $0xb8] sm:$0xff] }
  0x19   :  { %1012 = vmatprep.subr.bf16.mxu0 %v1165_v0  ;;  %v1001_v28 = vpack.c.bf16 %v42_v24, %v41_v23  ;;  %v43_v29 = vld [vmem:[#allocation2 + $0x50] sm:$0xff]  ;;  %v44_v30 = vld [vmem:[#allocation2 + $0x58] sm:$0xff]  ;;  %v1019_v31 = vpack.c.bf16 %v207_v27, %v206_v26  ;;  %v208_v32 = vld [vmem:[#allocation2 + $0xc0] sm:$0xff]  ;;  %v1245_v17 = vshrl.u32 %v196_v16, 7 }
  0x1a   :  { %993 = vmatpush3.bf16.msra.mxu1 %v992_v7  ;;  %v209_v33 = vld [vmem:[#allocation2 + $0xc8] sm:$0xff]  ;;  %v1004_v34 = vpack.c.bf16 %v44_v30, %v43_v29  ;;  %v45_v35 = vld [vmem:[#allocation2 + $0x60] sm:$0xff]  ;;  %v210_v38 = vld [vmem:[#allocation2 + $0xd0] sm:$0xff] }
  0x1b   :  { %994 = vmatprep.subr.bf16.mxu1 %v1165_v0  ;;  %773 = vmatmul.mubr.msk.f32.vlgmr.msra.gmra.mrb[0].mxu0 %vm52_vm1, %v49_v18  ;;  %v46_v36 = vld [vmem:[#allocation2 + $0x68] sm:$0xff]  ;;  %v1022_v37 = vpack.c.bf16 %v209_v33, %v208_v32  ;;  %v211_v39 = vld [vmem:[#allocation2 + $0xd8] sm:$0xff]  ;;  %v47_v41 = vld [vmem:[#allocation2 + $0x70] sm:$0xff]  ;;  %v198_v18 = vsub.s32 0, %v1245_v17 }
  0x1c   :  { %1014 = vmatpush3.bf16.msra.mxu0 %v1013_v19  ;;  %842 = vmatprep.mubr.msk.f32.mxu0 %vm1166_vm0, %v1167_v1  ;;  %v1007_v40 = vpack.c.bf16 %v46_v36, %v45_v35  ;;  %v48_v42 = vld [vmem:[#allocation2 + $0x78] sm:$0xff]  ;;  %v1025_v43 = vpack.c.bf16 %v211_v39, %v210_v38  ;;  %v212_v44 = vld [vmem:[#allocation2 + $0xe0] sm:$0xff]  ;;  %v213_v45 = vld [vmem:[#allocation2 + $0xe8] sm:$0xff] }
  0x1d   :  { %1015 = vmatprep.subr.bf16.mxu0 %v1165_v0  ;;  %v1010_v46 = vpack.c.bf16 %v48_v42, %v47_v41  ;;  %v1028_v47 = vpack.c.bf16 %v213_v45, %v212_v44  ;;  %v32_v48 = vld [vmem:[%s1296_s0] sm:$0xff]  ;;  %v214_v49 = vld [vmem:[#allocation2 + $0xf0] sm:$0xff]  ;;  %v215_v50 = vld [vmem:[#allocation2 + $0xf8] sm:$0xff] }
  0x1e   :  { %996 = vmatpush3.bf16.msra.mxu1 %v995_v14  ;;  %v1031_v51 = vpack.c.bf16 %v215_v50, %v214_v49  ;;  %v216_v52 = vld [vmem:[#allocation2 + $0x100] sm:$0xff]  ;;  %v217_v53 = vld [vmem:[#allocation2 + $0x108] sm:$0xff]  ;;  %v293_v55 = vld [vmem:[#allocation2 + $0x110] sm:$0xff]  ;;  %v220_v50 = vsub.s32 1, %v1245_v17 }
  0x1f   :  { %997 = vmatprep.subr.bf16.mxu1 %v1165_v0  ;;  %v1034_v54 = vpack.c.bf16 %v217_v53, %v216_v52  ;;  %v294_v56 = vld [vmem:[#allocation2 + $0x118] sm:$0xff]  ;;  %v295_v57 = vld [vmem:[#allocation2 + $0x120] sm:$0xff]  ;;  %v296_v59 = vld [vmem:[#allocation2 + $0x128] sm:$0xff] }
  0x20   :  { %1017 = vmatpush3.bf16.msra.mxu0 %v1016_v25  ;;  %v1037_v58 = vpack.c.bf16 %v294_v56, %v293_v55  ;;  %v1040_v60 = vpack.c.bf16 %v296_v59, %v295_v57  ;;  %v297_v61 = vld [vmem:[#allocation2 + $0x130] sm:$0xff]  ;;  %v298_v62 = vld [vmem:[#allocation2 + $0x138] sm:$0xff]  ;;  %v299_v2 = vld [vmem:[#allocation2 + $0x140] sm:$0xff] }
  0x21   :  { %1018 = vmatprep.subr.bf16.mxu0 %v1165_v0  ;;  %v1043_v63 = vpack.c.bf16 %v298_v62, %v297_v61  ;;  %v300_v3 = vld [vmem:[#allocation2 + $0x148] sm:$0xff]  ;;  %v301_v5 = vld [vmem:[#allocation2 + $0x150] sm:$0xff]  ;;  %v302_v6 = vld [vmem:[#allocation2 + $0x158] sm:$0xff] }
  0x22   :  { %999 = vmatpush3.bf16.msra.mxu1 %v998_v22  ;;  %v1046_v4 = vpack.c.bf16 %v300_v3, %v299_v2  ;;  %v1049_v7 = vpack.c.bf16 %v302_v6, %v301_v5  ;;  %v303_v8 = vld [vmem:[#allocation2 + $0x160] sm:$0xff]  ;;  %v304_v9 = vld [vmem:[#allocation2 + $0x168] sm:$0xff]  ;;  %v305_v11 = vld [vmem:[#allocation2 + $0x170] sm:$0xff] }
  0x23   :  { %1000 = vmatprep.subr.bf16.mxu1 %v1165_v0  ;;  %v1052_v10 = vpack.c.bf16 %v304_v9, %v303_v8  ;;  %v306_v12 = vld [vmem:[#allocation2 + $0x178] sm:$0xff]  ;;  %v1251_v19 = vld [vmem:[%s1299_s3] sm:$0xff]  ;;  %v308_v27 = vld [vmem:[#allocation2 + $0x188] sm:$0xff] }
  0x24   :  { %1020 = vmatpush3.bf16.msra.mxu0 %v1019_v31  ;;  %v1055_v13 = vpack.c.bf16 %v306_v12, %v305_v11  ;;  %v199_v20 = vrot.slane %v1251_v19, %v198_v18  ;;  %v307_v26 = vld [vmem:[#allocation2 + $0x180] sm:$0xff]  ;;  %v384_v29 = vld [vmem:[#allocation2 + $0x190] sm:$0xff]  ;;  %v385_v30 = vld [vmem:[#allocation2 + $0x198] sm:$0xff] }
  0x25   :  { %1021 = vmatprep.subr.bf16.mxu0 %v1165_v0  ;;  %v386_v31 = vld [vmem:[#allocation2 + $0x1a0] sm:$0xff]  ;;  %v1061_v32 = vpack.c.bf16 %v385_v30, %v384_v29  ;;  %v387_v33 = vld [vmem:[#allocation2 + $0x1a8] sm:$0xff]  ;;  %v388_v35 = vld [vmem:[#allocation2 + $0x1b0] sm:$0xff] }
  0x26   :  { %1002 = vmatpush3.bf16.msra.mxu1 %v1001_v28  ;;  %v1058_v28 = vpack.c.bf16 %v308_v27, %v307_v26  ;;  %v389_v36 = vld [vmem:[#allocation2 + $0x1b8] sm:$0xff]  ;;  %v390_v38 = vld [vmem:[#allocation2 + $0x1c0] sm:$0xff]  ;;  %v391_v39 = vld [vmem:[#allocation2 + $0x1c8] sm:$0xff] }
  0x27   :  { %1003 = vmatprep.subr.bf16.mxu1 %v1165_v0  ;;  %v392_v41 = vld [vmem:[#allocation2 + $0x1d0] sm:$0xff]  ;;  %v393_v42 = vld [vmem:[#allocation2 + $0x1d8] sm:$0xff]  ;;  %v394_v44 = vld [vmem:[#allocation2 + $0x1e0] sm:$0xff] }
  0x28   :  { %1023 = vmatpush3.bf16.msra.mxu0 %v1022_v37  ;;  %v1067_v37 = vpack.c.bf16 %v389_v36, %v388_v35  ;;  %v395_v45 = vld [vmem:[#allocation2 + $0x1e8] sm:$0xff]  ;;  %v398_v56 = vld [vmem:[#allocation2 + $0x200] sm:$0xff]  ;;  %v475_v59 = vld [vmem:[#allocation2 + $0x210] sm:$0xff] }
  0x29   :  { %1024 = vmatprep.subr.bf16.mxu0 %v1165_v0  ;;  %v399_v57 = vld [vmem:[#allocation2 + $0x208] sm:$0xff]  ;;  %v477_v61 = vld [vmem:[#allocation2 + $0x220] sm:$0xff]  ;;  %v479_v3 = vld [vmem:[#allocation2 + $0x230] sm:$0xff] }
  0x2a   :  { %1005 = vmatpush3.bf16.msra.mxu1 %v1004_v34  ;;  %v1064_v34 = vpack.c.bf16 %v387_v33, %v386_v31  ;;  %v481_v6 = vld [vmem:[#allocation2 + $0x240] sm:$0xff]  ;;  %v483_v9 = vld [vmem:[#allocation2 + $0x250] sm:$0xff]  ;;  %v488_v16 = vld [vmem:[#allocation2 + $0x278] sm:$0xff] }
  0x2b   :  { %1006 = vmatprep.subr.bf16.mxu1 %v1165_v0  ;;  %v485_v12 = vld [vmem:[#allocation2 + $0x260] sm:$0xff]  ;;  %v490_v27 = vld [vmem:[#allocation2 + $0x288] sm:$0xff]  ;;  %v566_v29 = vld [vmem:[#allocation2 + $0x290] sm:$0xff] }
  0x2c   :  { %1026 = vmatpush3.bf16.msra.mxu0 %v1025_v43  ;;  %v1073_v43 = vpack.c.bf16 %v393_v42, %v392_v41  ;;  %v489_v26 = vld [vmem:[#allocation2 + $0x280] sm:$0xff]  ;;  %v567_v30 = vld [vmem:[#allocation2 + $0x298] sm:$0xff]  ;;  %v569_v33 = vld [vmem:[#allocation2 + $0x2a8] sm:$0xff] }
  0x2d   :  { %1027 = vmatprep.subr.bf16.mxu0 %v1165_v0  ;;  %v568_v31 = vld [vmem:[#allocation2 + $0x2a0] sm:$0xff]  ;;  %v570_v35 = vld [vmem:[#allocation2 + $0x2b0] sm:$0xff]  ;;  %v571_v36 = vld [vmem:[#allocation2 + $0x2b8] sm:$0xff] }
  0x2e   :  { %1008 = vmatpush3.bf16.msra.mxu1 %v1007_v40  ;;  %v1070_v40 = vpack.c.bf16 %v391_v39, %v390_v38  ;;  %v573_v38 = vld [vmem:[#allocation2 + $0x2c8] sm:$0xff]  ;;  %v575_v41 = vld [vmem:[#allocation2 + $0x2d8] sm:$0xff] }
  0x2f   :  { %1009 = vmatprep.subr.bf16.mxu1 %v1165_v0 }
  0x30   :  { %1029 = vmatpush3.bf16.msra.mxu0 %v1028_v47  ;;  %v396_v47 = vld [vmem:[#allocation2 + $0x1f0] sm:$0xff] }
  0x31   :  { %1030 = vmatprep.subr.bf16.mxu0 %v1165_v0 }
  0x32   :  { %1011 = vmatpush3.bf16.msra.mxu1 %v1010_v46  ;;  %v1076_v46 = vpack.c.bf16 %v395_v45, %v394_v44  ;;  %v577_v44 = vld [vmem:[#allocation2 + $0x2e8] sm:$0xff] }
  0x33   :  { %1036 = vmatprep.subr.bf16.mxu1 %v1165_v0 }
  0x34   :  { %1032 = vmatpush3.bf16.msra.mxu0 %v1031_v51  ;;  %v221_v51 = vrot.slane %v1251_v19, %v220_v50 }
  0x35   :  { %808 = vmatmul.mubr.f32.vlgmr.msra.gmra.mrb[0].mxu1 %v32_v48  ;;  %1033 = vmatprep.subr.bf16.mxu0 %v1165_v0  ;;  %v397_v48 = vld [vmem:[#allocation2 + $0x1f8] sm:$0xff] }
  0x36   :  { %877 = vmatprep.mubr.msk.f32.mxu1 %vm1166_vm0, %v1167_v1  ;;  %1038 = vmatpush3.bf16.msra.mxu1 %v1037_v58  ;;  %v1079_v49 = vpack.c.bf16 %v397_v48, %v396_v47  ;;  %v1082_v58 = vpack.c.bf16 %v399_v57, %v398_v56  ;;  %v579_v47 = vld [vmem:[#allocation2 + $0x2f8] sm:$0xff]  ;;  %v581_v56 = vld [vmem:[#allocation2 + $0x308] sm:$0xff] }
  0x37   :  { %1039 = vmatprep.subr.bf16.mxu1 %v1165_v0 }
  0x38   :  { %1035 = vmatpush3.bf16.msra.mxu0 %v1034_v54 }
  0x39   :  { %1060 = vmatprep.subr.bf16.mxu0 %v1165_v0 }
  0x3a   :  { %1041 = vmatpush3.bf16.msra.mxu1 %v1040_v60  ;;  %v476_v60 = vld [vmem:[#allocation2 + $0x218] sm:$0xff] }
  0x3b   :  { %1042 = vmatprep.subr.bf16.mxu1 %v1165_v0  ;;  %v1085_v62 = vpack.c.bf16 %v476_v60, %v475_v59 }
  0x3e   :  { %1044 = vmatpush3.bf16.msra.mxu1 %v1043_v63  ;;  %v478_v63 = vld [vmem:[#allocation2 + $0x228] sm:$0xff] }
  0x3f   :  { %1045 = vmatprep.subr.bf16.mxu1 %v1165_v0  ;;  %v1088_v2 = vpack.c.bf16 %v478_v63, %v477_v61  ;;  %v584_v63 = vsub.s32 5, %v1245_v17 }
  0x42   :  { %1047 = vmatpush3.bf16.msra.mxu1 %v1046_v4  ;;  %v480_v4 = vld [vmem:[#allocation2 + $0x238] sm:$0xff] }
  0x43   :  { %1048 = vmatprep.subr.bf16.mxu1 %v1165_v0  ;;  %v1091_v5 = vpack.c.bf16 %v480_v4, %v479_v3 }
  0x46   :  { %1050 = vmatpush3.bf16.msra.mxu1 %v1049_v7  ;;  %v482_v7 = vld [vmem:[#allocation2 + $0x248] sm:$0xff] }
  0x47   :  { %1051 = vmatprep.subr.bf16.mxu1 %v1165_v0  ;;  %v1094_v8 = vpack.c.bf16 %v482_v7, %v481_v6 }
  0x4a   :  { %1053 = vmatpush3.bf16.msra.mxu1 %v1052_v10  ;;  %v484_v10 = vld [vmem:[#allocation2 + $0x258] sm:$0xff] }
  0x4b   :  { %1054 = vmatprep.subr.bf16.mxu1 %v1165_v0  ;;  %v1097_v11 = vpack.c.bf16 %v484_v10, %v483_v9 }
  0x4e   :  { %1056 = vmatpush3.bf16.msra.mxu1 %v1055_v13  ;;  %v486_v13 = vld [vmem:[#allocation2 + $0x268] sm:$0xff] }
  0x4f   :  { %1057 = vmatprep.subr.bf16.mxu1 %v1165_v0 }
  0x52   :  { %1059 = vmatpush3.bf16.msra.mxu1 %v1058_v28  ;;  %v1106_v28 = vpack.c.bf16 %v490_v27, %v489_v26 }
  0x53   :  { %1084 = vmatprep.subr.bf16.mxu1 %v1165_v0 }
  0xee   :  { %v122_v14 = vpop.f32.mrb[0].mxu0 }
  0xef   :  { %v774_v15 = vpop.f32.mrb[1].mxu0 }
  0xf0   :  { %v487_v15 = vld [vmem:[#allocation2 + $0x270] sm:$0xff] }
  0xf1   :  { %v1103_v18 = vpack.c.bf16 %v488_v16, %v487_v15 }
 0x108   :  { %v192_v21 = vpop.f32.mrb[0].mxu1 }
 0x109   :  { %v193_v22 = vadd.f32 %v192_v21, %v122_v14  ;;  %v809_v23 = vpop.f32.mrb[1].mxu1  ;;  %v1100_v14 = vpack.c.bf16 %v486_v13, %v485_v12 }
 0x10b   :  { %v200_v24 = vadd.f32 %v199_v20, %v193_v22  ;;  %v311_v20 = vsub.s32 2, %v1245_v17 }
 0x10d   :  { %v201_v25 = vmax.f32 %v200_v24, 0.0  ;;  %v312_v21 = vrot.slane %v1251_v19, %v311_v20 }
 0x10f   :  { %843 = vmatmul.mubr.f32.vlgmr.msra.gmra.mrb[2].mxu0 %v201_v25 }
 0x110   :  { %912 = vmatprep.mubr.msk.f32.mxu0 %vm1166_vm0, %v1167_v1  ;;  %1062 = vmatpush3.bf16.msra.mxu0 %v1061_v32  ;;  %v1109_v32 = vpack.c.bf16 %v567_v30, %v566_v29 }
 0x111   :  { %1063 = vmatprep.subr.bf16.mxu0 %v1165_v0 }
 0x114   :  { %1065 = vmatpush3.bf16.msra.mxu0 %v1064_v34  ;;  %v1112_v34 = vpack.c.bf16 %v569_v33, %v568_v31 }
 0x115   :  { %1066 = vmatprep.subr.bf16.mxu0 %v1165_v0 }
 0x118   :  { %1068 = vmatpush3.bf16.msra.mxu0 %v1067_v37  ;;  %v1115_v37 = vpack.c.bf16 %v571_v36, %v570_v35 }
 0x119   :  { %1069 = vmatprep.subr.bf16.mxu0 %v1165_v0 }
 0x11c   :  { %1071 = vmatpush3.bf16.msra.mxu0 %v1070_v40  ;;  %v574_v40 = vld [vmem:[#allocation2 + $0x2d0] sm:$0xff] }
 0x11d   :  { %1072 = vmatprep.subr.bf16.mxu0 %v1165_v0  ;;  %v1121_v42 = vpack.c.bf16 %v575_v41, %v574_v40 }
 0x120   :  { %1074 = vmatpush3.bf16.msra.mxu0 %v1073_v43  ;;  %v576_v43 = vld [vmem:[#allocation2 + $0x2e0] sm:$0xff] }
 0x121   :  { %1075 = vmatprep.subr.bf16.mxu0 %v1165_v0  ;;  %v1124_v45 = vpack.c.bf16 %v577_v44, %v576_v43 }
 0x124   :  { %1077 = vmatpush3.bf16.msra.mxu0 %v1076_v46  ;;  %v578_v46 = vld [vmem:[#allocation2 + $0x2f0] sm:$0xff] }
 0x125   :  { %1078 = vmatprep.subr.bf16.mxu0 %v1165_v0  ;;  %v1127_v48 = vpack.c.bf16 %v579_v47, %v578_v46 }
 0x128   :  { %1080 = vmatpush3.bf16.msra.mxu0 %v1079_v49  ;;  %v402_v49 = vsub.s32 3, %v1245_v17 }
 0x129   :  { %1081 = vmatprep.subr.bf16.mxu0 %v1165_v0 }
 0x12a   :  { %v403_v50 = vrot.slane %v1251_v19, %v402_v49 }
 0x12c   :  { %1083 = vmatpush3.bf16.msra.mxu0 %v1082_v58  ;;  %v493_v58 = vsub.s32 4, %v1245_v17 }
 0x12d   :  { %1108 = vmatprep.subr.bf16.mxu0 %v1165_v0 }
 0x12e   :  { %v494_v59 = vrot.slane %v1251_v19, %v493_v58 }
 0x1e2   :  { %v288_v52 = vpop.f32.mrb[2].mxu0 }
 0x1e3   :  { %v289_v53 = vadd.f32 %v288_v52, %v221_v51  ;;  %v844_v54 = vpop.f32.mrb[3].mxu0 }
 0x1e5   :  { %v292_v55 = vmax.f32 %v289_v53, 0.0 }
 0x1e7   :  { %878 = vmatmul.mubr.f32.vlgmr.msra.gmra.mrb[2].mxu1 %v292_v55  ;;  %v580_v55 = vld [vmem:[#allocation2 + $0x300] sm:$0xff] }
 0x1e8   :  { %947 = vmatprep.mubr.msk.f32.mxu1 %vm1166_vm0, %v1167_v1  ;;  %1086 = vmatpush3.bf16.msra.mxu1 %v1085_v62  ;;  %v1130_v57 = vpack.c.bf16 %v581_v56, %v580_v55 }
 0x1e9   :  { %1087 = vmatprep.subr.bf16.mxu1 %v1165_v0 }
 0x1ec   :  { %1089 = vmatpush3.bf16.msra.mxu1 %v1088_v2  ;;  %v585_v2 = vrot.slane %v1251_v19, %v584_v63 }
 0x1ed   :  { %1090 = vmatprep.subr.bf16.mxu1 %v1165_v0 }
 0x1f0   :  { %1092 = vmatpush3.bf16.msra.mxu1 %v1091_v5 }
 0x1f1   :  { %1093 = vmatprep.subr.bf16.mxu1 %v1165_v0 }
 0x1f4   :  { %1095 = vmatpush3.bf16.msra.mxu1 %v1094_v8 }
 0x1f5   :  { %1096 = vmatprep.subr.bf16.mxu1 %v1165_v0 }
 0x1f8   :  { %1098 = vmatpush3.bf16.msra.mxu1 %v1097_v11 }
 0x1f9   :  { %1099 = vmatprep.subr.bf16.mxu1 %v1165_v0 }
 0x1fc   :  { %1101 = vmatpush3.bf16.msra.mxu1 %v1100_v14 }
 0x1fd   :  { %1102 = vmatprep.subr.bf16.mxu1 %v1165_v0 }
 0x200   :  { %1104 = vmatpush3.bf16.msra.mxu1 %v1103_v18 }
 0x201   :  { %1105 = vmatprep.subr.bf16.mxu1 %v1165_v0 }
 0x204   :  { %1107 = vmatpush3.bf16.msra.mxu1 %v1106_v28 }
 0x2ba   :  { %v379_v22 = vpop.f32.mrb[2].mxu1 }
 0x2bb   :  { %v380_v23 = vadd.f32 %v379_v22, %v312_v21  ;;  %v879_v24 = vpop.f32.mrb[3].mxu1 }
 0x2bd   :  { %v383_v25 = vmax.f32 %v380_v23, 0.0 }
 0x2bf   :  { %913 = vmatmul.mubr.f32.vlgmr.msra.gmra.mrb[4].mxu0 %v383_v25 }
 0x2c0   :  { %982 = vmatprep.mubr.msk.f32.mxu0 %vm1166_vm0, %v1167_v1  ;;  %1110 = vmatpush3.bf16.msra.mxu0 %v1109_v32  ;;  %v572_v1 = vld [vmem:[#allocation2 + $0x2c0] sm:$0xff] }
 0x2c1   :  { %1111 = vmatprep.subr.bf16.mxu0 %v1165_v0  ;;  %v1118_v39 = vpack.c.bf16 %v573_v38, %v572_v1 }
 0x2c4   :  { %1113 = vmatpush3.bf16.msra.mxu0 %v1112_v34 }
 0x2c5   :  { %1114 = vmatprep.subr.bf16.mxu0 %v1165_v0 }
 0x2c8   :  { %1116 = vmatpush3.bf16.msra.mxu0 %v1115_v37 }
 0x2c9   :  { %1117 = vmatprep.subr.bf16.mxu0 %v1165_v0 }
 0x2cc   :  { %1119 = vmatpush3.bf16.msra.mxu0 %v1118_v39 }
 0x2cd   :  { %1120 = vmatprep.subr.bf16.mxu0 %v1165_v0 }
 0x2d0   :  { %1122 = vmatpush3.bf16.msra.mxu0 %v1121_v42 }
 0x2d1   :  { %1123 = vmatprep.subr.bf16.mxu0 %v1165_v0 }
 0x2d4   :  { %1125 = vmatpush3.bf16.msra.mxu0 %v1124_v45 }
 0x2d5   :  { %1126 = vmatprep.subr.bf16.mxu0 %v1165_v0 }
 0x2d8   :  { %1128 = vmatpush3.bf16.msra.mxu0 %v1127_v48 }
 0x2d9   :  { %1129 = vmatprep.subr.bf16.mxu0 %v1165_v0 }
 0x2dc   :  { %1131 = vmatpush3.bf16.msra.mxu0 %v1130_v57 }
 0x392   :  { %v470_v51 = vpop.f32.mrb[4].mxu0 }
 0x393   :  { %v471_v52 = vadd.f32 %v470_v51, %v403_v50  ;;  %v914_v53 = vpop.f32.mrb[5].mxu0 }
 0x395   :  { %v474_v54 = vmax.f32 %v471_v52, 0.0 }
 0x397   :  { %948 = vmatmul.mubr.f32.vlgmr.msra.gmra.mrb[4].mxu1 %v474_v54 }
 0x46a   :  { %v561_v60 = vpop.f32.mrb[4].mxu1 }
 0x46b   :  { %v562_v61 = vadd.f32 %v561_v60, %v494_v59  ;;  %v949_v0 = vpop.f32.mrb[5].mxu1 }
 0x46d   :  { %v565_v62 = vmax.f32 %v562_v61, 0.0 }
 0x46f   :  { %983 = vmatmul.mubr.f32.vlgmr.msra.gmra.mrb[6].mxu0 %v565_v62 }
 0x542   :  { %v652_v3 = vpop.f32.mrb[6].mxu0 }
 0x543   :  { %v653_v4 = vadd.f32 %v652_v3, %v585_v2  ;;  %v984_v5 = vpop.f32.mrb[7].mxu0 }
 0x545   :  { %656 = vst [vmem:[%s1300_s4] sm:$0xff] %v653_v4 }
 0x546   :  { %661 = vsyncpa [#allocation3], 1 }

</bundles_post_ra>
